<compile_context>
chip_gen: v7x
topology: tpu7x:2x2x1
jax: 0.10.0
libtpu: 0.0.40
codegen_flags: <defaults>
</compile_context>

<pallas_src>
import functools

import jax
import jax.numpy as jnp
from jax.experimental import pallas as pl
from jax.experimental.pallas import tpu as pltpu


def _round_up(x, m):
    return (x + m - 1) // m * m


def _convent_block_kernel(x_ref, w_ref, b_ref, o_ref):
    # Grid is (parallel, parallel, K-reduction); K is always axis 2.
    k = pl.program_id(2)

    @pl.when(k == 0)
    def _():
        o_ref[...] = jnp.zeros_like(o_ref)

    # x tile: (tm, tk); w tile: (tk, tn) — canonical MXU matmul, f32 accumulate
    # directly into the resident f32 output block.
    o_ref[...] += jnp.dot(x_ref[...], w_ref[...],
                          preferred_element_type=jnp.float32)

    @pl.when(k == pl.num_programs(2) - 1)
    def _():
        # Epilogue once per output tile: bias add (VPU) + tanh (EUP), f32.
        o_ref[...] = jnp.tanh(o_ref[...] + b_ref[...])


def make_convent_block(weight, bias, *, tm=512, tn=512, tk=1024,
                       compute_dtype=jnp.bfloat16):
    """Build a forward(x) = tanh(x @ weight.T + bias) callable.

    weight: (out_N, in_N) float32 (PyTorch nn.Linear layout)
    bias:   (out_N,)      float32
    compute_dtype: MXU input dtype (bf16 default; f32 accumulation always).

    All weight/bias padding, casting and transposition happens here, once.
    """
    out_N, in_N = weight.shape
    assert bias.shape == (out_N,)
    cdt = jnp.dtype(compute_dtype if compute_dtype is not None else jnp.float32)
    # sublane pack of the compute dtype: 8 (f32), 16 (bf16), 32 (int8/fp8)
    sub_pack = {4: 8, 2: 16, 1: 32}[cdt.itemsize]

    # Shrink N/K tiles for small layers while staying (8, 128) aligned.
    tn_eff = min(tn, _round_up(out_N, 128))
    tk_eff = min(tk, _round_up(in_N, 128))
    N = _round_up(out_N, tn_eff)
    K = _round_up(in_N, tk_eff)
    gn, gk = N // tn_eff, K // tk_eff

    # One-time: pad -> transpose to (K, N) -> cast.  Zero padding is inert in
    # the matmul; bias stays f32 for the exact epilogue.
    w_kn = jnp.pad(weight, ((0, N - out_N), (0, K - in_N))).T.astype(cdt)
    b_p = jnp.pad(bias, (0, N - out_N)).reshape(1, N).astype(jnp.float32)

    def forward(x):
        B, in_N_x = x.shape
        assert in_N_x == in_N, "input feature dim mismatch"

        # tm: single M tile (rounded to the sublane pack) when it fits.
        if _round_up(B, sub_pack) <= tm:
            tm_eff = _round_up(B, sub_pack)
        else:
            tm_eff = tm
        M = _round_up(B, tm_eff)
        gm = M // tm_eff

        x_p = x.astype(cdt)
        if (M, K) != (B, in_N):
            x_p = jnp.pad(x_p, ((0, M - B), (0, K - in_N)))

        # Megacore (v7x): put the larger parallel extent first.
        swap = gn > gm
        if swap:
            grid = (gn, gm, gk)
            x_map = lambda j, i, k: (i, k)
            w_map = lambda j, i, k: (k, j)
            b_map = lambda j, i, k: (0, j)
            o_map = lambda j, i, k: (i, j)
        else:
            grid = (gm, gn, gk)
            x_map = lambda i, j, k: (i, k)
            w_map = lambda i, j, k: (k, j)
            b_map = lambda i, j, k: (0, j)
            o_map = lambda i, j, k: (i, j)

        # Double-buffered inputs + resident/double-buffered f32 output tile,
        # plus headroom for Mosaic internal scratch.
        vmem_bytes = (2 * (tm_eff * tk_eff + tk_eff * tn_eff) * cdt.itemsize
                      + 2 * tm_eff * tn_eff * 4
                      + 2 * tn_eff * 4)
        vmem_limit = int(vmem_bytes + (8 << 20))

        cost = pl.CostEstimate(
            flops=2 * M * N * K,
            transcendentals=M * N,
            bytes_accessed=(x_p.size * x_p.dtype.itemsize
                            + w_kn.size * w_kn.dtype.itemsize
                            + b_p.size * b_p.dtype.itemsize
                            + M * N * 4),
        )

        out = pl.pallas_call(
            _convent_block_kernel,
            out_shape=jax.ShapeDtypeStruct((M, N), jnp.float32),
            grid_spec=pltpu.PrefetchScalarGridSpec(
                num_scalar_prefetch=0,
                grid=grid,
                in_specs=[
                    pl.BlockSpec((tm_eff, tk_eff), x_map),   # x      (M, K)
                    pl.BlockSpec((tk_eff, tn_eff), w_map),   # weight (K, N)
                    pl.BlockSpec((1, tn_eff), b_map),        # bias   (1, N)
                ],
                out_specs=pl.BlockSpec((tm_eff, tn_eff), o_map),
            ),
            compiler_params=pltpu.CompilerParams(
                dimension_semantics=("parallel", "parallel", "arbitrary"),
                vmem_limit_bytes=vmem_limit,
            ),
            cost_estimate=cost,
        )(x_p, w_kn, b_p)

        if (M, N) != (B, out_N):
            out = out[:B, :out_N]
        return out

    return forward


def convent_block_ref(x, weight, bias):
    return jnp.tanh(
        jnp.dot(x, weight.T, preferred_element_type=jnp.float32) + bias
    ).astype(jnp.float32)


if __name__ == "__main__":
    key = jax.random.PRNGKey(0)
    keys = jax.random.split(key, 9)

    # --- 1) small module-like shapes, default bf16 compute path -------------
    B, in_N, out_N = 8, 32, 64
    x = jax.random.normal(keys[0], (B, in_N), dtype=jnp.float32)
    bound = 1.0 / jnp.sqrt(jnp.float32(in_N))
    w = jax.random.uniform(keys[1], (out_N, in_N), minval=-bound, maxval=bound,
                           dtype=jnp.float32)
    b = jax.random.uniform(keys[2], (out_N,), minval=-bound, maxval=bound,
                           dtype=jnp.float32)

    fwd = make_convent_block(w, b)                       # bf16 inputs, f32 acc
    out = jax.block_until_ready(fwd(x))
    ref = convent_block_ref(x, w, b)
    assert out.shape == (B, out_N) and out.dtype == jnp.float32
    assert jnp.allclose(out, ref, atol=2e-2, rtol=2e-2), "mismatch (small, bf16)"

    # --- 2) multi-tile M/N/K, exact f32 path, unswapped grid ----------------
    B2, in_N2, out_N2 = 256, 384, 256
    x2 = jax.random.normal(keys[3], (B2, in_N2), dtype=jnp.float32)
    bound2 = 1.0 / jnp.sqrt(jnp.float32(in_N2))
    w2 = jax.random.uniform(keys[4], (out_N2, in_N2), minval=-bound2,
                            maxval=bound2, dtype=jnp.float32)
    b2 = jax.random.uniform(keys[5], (out_N2,), minval=-bound2, maxval=bound2,
                            dtype=jnp.float32)

    fwd2 = make_convent_block(w2, b2, tm=128, tn=128, tk=128,
                              compute_dtype=jnp.float32)  # grid (2, 2, 3)
    out2 = jax.block_until_ready(fwd2(x2))
    ref2 = convent_block_ref(x2, w2, b2)
    assert out2.shape == (B2, out_N2)
    assert jnp.allclose(out2, ref2, atol=1e-4, rtol=1e-4), "mismatch (f32 tiled)"

    # --- 3) small-batch / wide-output: exercises the swapped (megacore) grid -
    B3, in_N3, out_N3 = 16, 256, 512
    x3 = jax.random.normal(keys[6], (B3, in_N3), dtype=jnp.float32)
    bound3 = 1.0 / jnp.sqrt(jnp.float32(in_N3))
    w3 = jax.random.uniform(keys[7], (out_N3, in_N3), minval=-bound3,
                            maxval=bound3, dtype=jnp.float32)
    b3 = jax.random.uniform(keys[8], (out_N3,), minval=-bound3, maxval=bound3,
                            dtype=jnp.float32)

    fwd3 = make_convent_block(w3, b3, tm=128, tn=128, tk=128)  # gn=4 > gm=1
    out3 = jax.block_until_ready(fwd3(x3))
    ref3 = convent_block_ref(x3, w3, b3)
    assert out3.shape == (B3, out_N3)
    assert jnp.allclose(out3, ref3, atol=2e-2, rtol=2e-2), "mismatch (bf16 swapped)"

    print("KERNEL_OK")
</pallas_src>

<mosaic_0001>
module attributes {stable_mosaic.version = 11 : i64} {
  func.func @_convent_block_kernel(%arg0: i32, %arg1: i32, %arg2: i32, %arg3: memref<16x128xbf16, #tpu.memory_space<vmem>>, %arg4: memref<128x128xbf16, #tpu.memory_space<vmem>>, %arg5: memref<1x128xf32, #tpu.memory_space<vmem>>, %arg6: memref<16x128xf32, #tpu.memory_space<vmem>>) attributes {dimension_semantics = [#tpu.dimension_semantics<parallel>, #tpu.dimension_semantics<parallel>, #tpu.dimension_semantics<arbitrary>], iteration_bounds = array<i64: 1, 1, 1>, scalar_prefetch = 0 : i64, scratch_operands = 0 : i64, tpu.core_type = #tpu.core_type<tc>, window_params = [{transform_indices = @transform_0, window_bounds = array<i64: 16, 128>}, {transform_indices = @transform_1, window_bounds = array<i64: 128, 128>}, {transform_indices = @transform_2, window_bounds = array<i64: 1, 128>}, {transform_indices = @transform_3, window_bounds = array<i64: 16, 128>}]} {
    %c0_i32 = arith.constant 0 : i32
    %0 = arith.cmpi eq, %arg2, %c0_i32 : i32
    %1 = arith.extui %0 : i1 to i32
    %c0_i32_0 = arith.constant 0 : i32
    %2 = arith.cmpi ne, %1, %c0_i32_0 : i32
    scf.if %2 {
      %cst_10 = arith.constant 0.000000e+00 : f32
      %12 = vector.broadcast %cst_10 : f32 to vector<16x128xf32>
      %c0_11 = arith.constant 0 : index
      %c0_12 = arith.constant 0 : index
      %13 = vector.load %arg6[%c0_11, %c0_12] : memref<16x128xf32, #tpu.memory_space<vmem>>, vector<16x128xf32>
      tpu.vector_store %arg6[%c0_11, %c0_12], %12 {strides = array<i32>} : memref<16x128xf32, #tpu.memory_space<vmem>>, vector<16x128xf32>,
    } else {
    }
    %c0 = arith.constant 0 : index
    %c0_1 = arith.constant 0 : index
    %3 = vector.load %arg6[%c0, %c0_1] : memref<16x128xf32, #tpu.memory_space<vmem>>, vector<16x128xf32>
    %c0_2 = arith.constant 0 : index
    %c0_3 = arith.constant 0 : index
    %4 = vector.load %arg3[%c0_2, %c0_3] : memref<16x128xbf16, #tpu.memory_space<vmem>>, vector<16x128xbf16>
    %c0_4 = arith.constant 0 : index
    %c0_5 = arith.constant 0 : index
    %5 = vector.load %arg4[%c0_4, %c0_5] : memref<128x128xbf16, #tpu.memory_space<vmem>>, vector<128x128xbf16>
    %cst = arith.constant dense<0.000000e+00> : vector<16x128xf32>
    %6 = tpu.matmul %4, %5, %cst {dimension_numbers = #tpu.dot_dimension_numbers<[1], [0], [0], [1], [0, 0, 1, 1], [], []>} : vector<16x128xbf16>, vector<128x128xbf16>, vector<16x128xf32> -> vector<16x128xf32>
    %7 = arith.addf %3, %6 : vector<16x128xf32>
    %c0_6 = arith.constant 0 : index
    %c0_7 = arith.constant 0 : index
    %8 = vector.load %arg6[%c0_6, %c0_7] : memref<16x128xf32, #tpu.memory_space<vmem>>, vector<16x128xf32>
    tpu.vector_store %arg6[%c0_6, %c0_7], %7 {strides = array<i32>} : memref<16x128xf32, #tpu.memory_space<vmem>>, vector<16x128xf32>,
    %c0_i32_8 = arith.constant 0 : i32
    %9 = arith.cmpi eq, %arg2, %c0_i32_8 : i32
    %10 = arith.extui %9 : i1 to i32
    %c0_i32_9 = arith.constant 0 : i32
    %11 = arith.cmpi ne, %10, %c0_i32_9 : i32
    scf.if %11 {
      %c0_10 = arith.constant 0 : index
      %c0_11 = arith.constant 0 : index
      %12 = vector.load %arg6[%c0_10, %c0_11] : memref<16x128xf32, #tpu.memory_space<vmem>>, vector<16x128xf32>
      %c0_12 = arith.constant 0 : index
      %c0_13 = arith.constant 0 : index
      %13 = vector.load %arg5[%c0_12, %c0_13] : memref<1x128xf32, #tpu.memory_space<vmem>>, vector<1x128xf32>
      %14 = vector.broadcast %13 : vector<1x128xf32> to vector<16x128xf32>
      %15 = arith.addf %12, %14 : vector<16x128xf32>
      %16 = math.tanh %15 : vector<16x128xf32>
      %c0_14 = arith.constant 0 : index
      %c0_15 = arith.constant 0 : index
      %17 = vector.load %arg6[%c0_14, %c0_15] : memref<16x128xf32, #tpu.memory_space<vmem>>, vector<16x128xf32>
      tpu.vector_store %arg6[%c0_14, %c0_15], %16 {strides = array<i32>} : memref<16x128xf32, #tpu.memory_space<vmem>>, vector<16x128xf32>,
    } else {
    }
    return
  }
  func.func @transform_0(%arg0: i32, %arg1: i32, %arg2: i32) -> (i32, i32) {
    %c0_i32 = arith.constant 0 : i32
    return %arg0, %arg2 : i32, i32
  }
  func.func @transform_1(%arg0: i32, %arg1: i32, %arg2: i32) -> (i32, i32) {
    %c0_i32 = arith.constant 0 : i32
    return %arg2, %arg1 : i32, i32
  }
  func.func @transform_2(%arg0: i32, %arg1: i32, %arg2: i32) -> (i32, i32) {
    %c0_i32 = arith.constant 0 : i32
    %c0_i32_0 = arith.constant 0 : i32
    return %c0_i32, %arg1 : i32, i32
  }
  func.func @transform_3(%arg0: i32, %arg1: i32, %arg2: i32) -> (i32, i32) {
    %c0_i32 = arith.constant 0 : i32
    return %arg0, %arg1 : i32, i32
  }
}

</mosaic_0001>

<bundles_post_ra>
// kernel: tpu_custom_call.1
= control target key start
LH: loop header
LB: loop body
LE: loop exit
PB: predicated region body
PF: predicated region fallthrough
CT: control target
= control target key end

     0   :  { %8 = vsyncpa [#allocation3], 0  ;;  %s406_s0 = inlined_call_operand.hbm [shape: bf16[16,128], index: 0, kind: input, shape index: {}]   ;;  %s407_s1 = inlined_call_operand.hbm [shape: bf16[128,128], index: 1, kind: input, shape index: {}]   ;;  %s408_s2 = inlined_call_operand.vmem [shape: f32[1,128], index: 2, kind: input, shape index: {}]   ;;  %s409_s3 = inlined_call_operand.hbm [shape: f32[16,128], index: 3, kind: output, shape index: {}]  }
   0x1   :  { %9 = vsyncpa [#allocation6], 0 }
   0x2   :  { %10 = vsyncpa [#allocation4], 0  ;;  %s338_s12 = smov [#allocation2]   ;;  %s266_s16 = scalar_lea.hbm %s406_s0, 128 }
   0x3   :  { %s16_s13 = sshll.u32 %s338_s12, 4  ;;  %p267_p0 = scmp.ne.s32.totalorder %s406_s0, %s266_s16  ;;  %s17_s13 = int_to_ptr.vmem [resolvable:$true] %s16_s13 }
   0x4   :  { %p270_p1 = scmp.lt.u32.totalorder %s266_s16, %s406_s0 }
   0x6   :  { %p272_p2 = pnand %p270_p1, %p267_p0 }
   0x8   :  { %275 = shalt.err (!%p272_p2)
}
   0x9   :  { %s276_s21 = scalar_lea.vmem %s17_s13, 128  ;;  %p281_p4 = scmp.lt.s32.totalorder %s17_s13, %s17_s13 }
   0xa   :  { %p277_p3 = scmp.ne.s32.totalorder %s17_s13, %s276_s21  ;;  %p282_p5 = scmp.lt.s32.totalorder %s276_s21, %s276_s21 }
   0xc   :  { %p283_p6 = por %p282_p5, %p281_p4 }
   0xe   :  { %p284_p7 = pnand %p283_p6, %p277_p3 }
  0x10   :  { %287 = shalt.err (!%p284_p7)
}
  0x11   :  { %s339_s22 = smov 64   ;;  %s340_s23 = smov 4  }
  0x12   :  { %22 = dma.hbm_to_vmem [thread:$0]  %s406_s0, 128, %s17_s13, [#allocation3], %s339_s22, %s339_s22, %s340_s23  }
  0x13   :  { %s341_s26 = smov [#allocation5]   ;;  %s288_s30 = scalar_lea.hbm %s407_s1, 1024 }
  0x14   :  { %s28_s27 = sshll.u32 %s341_s26, 4  ;;  %p289_p8 = scmp.ne.s32.totalorder %s407_s1, %s288_s30  ;;  %s29_s27 = int_to_ptr.vmem [resolvable:$true] %s28_s27 }
  0x15   :  { %p292_p9 = scmp.lt.u32.totalorder %s288_s30, %s407_s1 }
  0x17   :  { %p294_p10 = pnand %p292_p9, %p289_p8 }
  0x19   :  { %297 = shalt.err (!%p294_p10)
}
  0x1a   :  { %s298_s8 = scalar_lea.vmem %s29_s27, 1024  ;;  %p303_p12 = scmp.lt.s32.totalorder %s29_s27, %s29_s27 }
  0x1b   :  { %p299_p11 = scmp.ne.s32.totalorder %s29_s27, %s298_s8  ;;  %p304_p13 = scmp.lt.s32.totalorder %s298_s8, %s298_s8 }
  0x1d   :  { %p305_p0 = por %p304_p13, %p303_p12 }
  0x1f   :  { %p306_p1 = pnand %p305_p0, %p299_p11 }
  0x21   :  { %309 = shalt.err (!%p306_p1)
}
  0x22   :  { %34 = dma.hbm_to_vmem [thread:$0]  %s407_s1, 1024, %s29_s27, [#allocation6], %s339_s22, %s339_s22, %s340_s23  }
  0x23   :  { %332 = dma.done.wait [#allocation3], 128  }
  0x24   :  { %333 = vsyncadd [#allocation3], 4294967168 }
  0x25   :  { %334 = dma.done.wait [#allocation6], 1024  }
  0x26   :  { %335 = vsyncadd [#allocation6], 4294966272  ;;  %v342_v0 = vmov 0.0   ;;  %vm343_vm0 = vmmov 0   ;;  %v253_v1 = vld [vmem:[#allocation5] sm:$0xff]   ;;  %v254_v2 = vld [vmem:[#allocation5 + $0x8] sm:$0xff]  }
  0x27   :  { %224 = vmatprep.subr.bf16.mxu0 %v342_v0  ;;  %240 = vmatprep.mubr.msk.bf16.mxu0 %vm343_vm0, %v342_v0  ;;  %v255_v3 = vld [vmem:[#allocation5 + $0x10] sm:$0xff]   ;;  %v256_v4 = vld [vmem:[#allocation5 + $0x18] sm:$0xff]   ;;  %v257_v5 = vld [vmem:[#allocation5 + $0x20] sm:$0xff]   ;;  %s344_s11 = smov [#allocation7]  }
  0x28   :  { %225 = vmatpush3.bf16.msra.mxu0 %v253_v1  ;;  %v258_v6 = vld [vmem:[#allocation5 + $0x28] sm:$0xff]   ;;  %v259_v7 = vld [vmem:[#allocation5 + $0x30] sm:$0xff]   ;;  %v260_v8 = vld [vmem:[#allocation5 + $0x38] sm:$0xff]   ;;  %s192_s12 = sshll.u32 %s344_s11, 4  ;;  %s193_s12 = int_to_ptr.vmem [resolvable:$true] %s192_s12 }
  0x29   :  { %226 = vmatprep.subr.bf16.mxu0 %v342_v0  ;;  %v261_v9 = vld [vmem:[#allocation2] sm:$0xff]   ;;  %s310_s13 = scalar_lea.vmem %s193_s12, 256  ;;  %p315_p3 = scmp.lt.s32.totalorder %s193_s12, %s193_s12 }
  0x2a   :  { %v214_v11 = vld [vmem:[%s408_s2] ss:$0 sm:$0xff]  ;;  %p311_p2 = scmp.ne.s32.totalorder %s193_s12, %s310_s13  ;;  %p316_p4 = scmp.lt.s32.totalorder %s310_s13, %s310_s13 }
  0x2c   :  { %227 = vmatpush3.bf16.msra.mxu0 %v254_v2  ;;  %p317_p5 = por %p316_p4, %p315_p3 }
  0x2d   :  { %228 = vmatprep.subr.bf16.mxu0 %v342_v0 }
  0x2e   :  { %p318_p6 = pnand %p317_p5, %p311_p2 }
  0x30   :  { %229 = vmatpush3.bf16.msra.mxu0 %v255_v3 }
  0x31   :  { %230 = vmatprep.subr.bf16.mxu0 %v342_v0 }
  0x34   :  { %231 = vmatpush3.bf16.msra.mxu0 %v256_v4 }
  0x35   :  { %232 = vmatprep.subr.bf16.mxu0 %v342_v0 }
  0x38   :  { %233 = vmatpush3.bf16.msra.mxu0 %v257_v5 }
  0x39   :  { %234 = vmatprep.subr.bf16.mxu0 %v342_v0 }
  0x3c   :  { %235 = vmatpush3.bf16.msra.mxu0 %v258_v6 }
  0x3d   :  { %236 = vmatprep.subr.bf16.mxu0 %v342_v0 }
  0x40   :  { %237 = vmatpush3.bf16.msra.mxu0 %v259_v7 }
  0x41   :  { %238 = vmatprep.subr.bf16.mxu0 %v342_v0 }
  0x44   :  { %239 = vmatpush3.bf16.msra.mxu0 %v260_v8 }
  0x47   :  { %241 = vmatmul.mubr.bf16.vlgmr.msra.gmra.mrb[0].mxu0 %v261_v9 }
 0x11a   :  { %v158_v10 = vpop.f32.mrb[0].mxu0 }
 0x11b   :  { %v242_v12 = vpop.f32.mrb[1].mxu0  ;;  %v181_v15 = vadd.f32 %v214_v11, %v158_v10 }
 0x11c   :  { %v161_v13 = vpop.f32.mrb[2].mxu0 }
 0x11d   :  { %v243_v14 = vpop.f32.mrb[3].mxu0  ;;  %v182_v16 = vadd.f32 %v214_v11, %v161_v13  ;;  %262 = vtanh.f32 %v181_v15 }
 0x11f   :  { %264 = vtanh.f32 %v182_v16 }
 0x127   :  { %v263_v17 = vpop.eup %262 }
 0x128   :  { %185 = vst [vmem:[#allocation7] sm:$0xff] %v263_v17 }
 0x129   :  { %v265_v18 = vpop.eup %264 }
 0x12a   :  { %186 = vst [vmem:[#allocation7 + $0x8] sm:$0xff] %v265_v18 }
 0x12b   :  { %321 = shalt.err (!%p318_p6)
}
 0x12c   :  { %s322_s15 = scalar_lea.hbm %s409_s3, 256 }
 0x12d   :  { %p323_p7 = scmp.ne.s32.totalorder %s409_s3, %s322_s15  ;;  %p326_p8 = scmp.lt.u32.totalorder %s322_s15, %s409_s3 }
 0x12f   :  { %p328_p9 = pnand %p326_p8, %p323_p7 }
 0x131   :  { %331 = shalt.err (!%p328_p9)
}
 0x132   :  { %s345_s20 = smov 128   ;;  %s346_s21 = smov 8  }
 0x133   :  { %198 = dma.vmem_to_hbm [thread:$0]  %s193_s12, 256, %s409_s3, [#allocation4], %s345_s20, %s345_s20, %s346_s21  }
 0x134   :  { %336 = dma.done.wait [#allocation4], 256  }
 0x135   :  { %337 = vsyncadd [#allocation4], 4294967040 }
 0x136   :  { %202 = vsyncpa [#allocation3], 1 }
 0x137   :  { %203 = vsyncpa [#allocation6], 1 }
 0x138   :  { %204 = vsyncpa [#allocation4], 1 }

</bundles_post_ra>
